<compile_context>
chip_gen: v5e
topology: v5e:2x2
jax: 0.10.0
libtpu: 0.0.40
codegen_flags: <defaults>
</compile_context>

<pallas_src>
import jax
import jax.numpy as jnp
from jax.experimental import pallas as pl
from jax.experimental.pallas import tpu as pltpu


# --------------------------------------------------------------------------
# Hardware-aware budgets
# --------------------------------------------------------------------------
def _tpu_vmem_and_cores():
    """Best-effort (VMEM limit, block budget, core count); safe defaults."""
    cap = 64 * 1024 * 1024          # conservative default: v7x is 64 MiB / TC
    cores = 1
    try:
        info = pltpu.get_tpu_info()
        cap = int(getattr(info, "vmem_capacity_bytes", cap) or cap)
        for name in ("num_cores", "core_count", "num_tensorcores"):
            v = getattr(info, name, None)
            if v:
                cores = int(v)
                break
    except Exception:
        pass
    # ~80% of capacity as the scoped limit (128 MiB -> ~102 MiB, 64 -> ~51),
    # ~56% as the double-buffered x-in + x-out block budget (weights, gate
    # and pooled scratch are tiny; leave headroom for compiler scratch).
    return int(cap * 0.80), int(cap * 0.56), cores


# --------------------------------------------------------------------------
# Kernels
# --------------------------------------------------------------------------
def _se_fused_kernel(x_ref, w1t_ref, w2t_ref, o_ref):
    """Fused pool -> FC gate -> scale for one (bb, C, HW) batch tile."""
    inv_hw = 1.0 / x_ref.shape[-1]
    # f32-accumulating reduce: no full-size f32 temp of the (bb, C, HW) block.
    pooled = jnp.sum(x_ref[...], axis=-1, dtype=jnp.float32) * inv_hw   # (bb, C)

    # Batched excitation: (bb, C) @ (C, Cr) -> relu -> (bb, Cr) @ (Cr, C).
    h = jnp.maximum(
        jnp.dot(pooled, w1t_ref[...], preferred_element_type=jnp.float32), 0.0)
    gate = jax.nn.sigmoid(
        jnp.dot(h, w2t_ref[...], preferred_element_type=jnp.float32))   # (bb, C)

    # Scale in the input dtype (bf16 stays bf16); re-index the ref rather than
    # keeping a long-lived full-block binding across the gate computation.
    o_ref[...] = (x_ref[...] * gate.astype(o_ref.dtype)[:, :, None]).astype(o_ref.dtype)


def _se_pool_kernel(x_ref, sum_ref):
    """Accumulate per-row sums across the (innermost) HW grid axis."""
    @pl.when(pl.program_id(1) == 0)
    def _():
        sum_ref[...] = jnp.zeros_like(sum_ref)
    sum_ref[...] += jnp.sum(x_ref[...], axis=-1, keepdims=True, dtype=jnp.float32)


def _se_scale_kernel(x_ref, gate_ref, o_ref):
    """Pure mem-bound broadcast multiply: out = x * gate."""
    o_ref[...] = (x_ref[...] * gate_ref[...]).astype(o_ref.dtype)


# --------------------------------------------------------------------------
# Tile selection
# --------------------------------------------------------------------------
def _largest_divisor_leq(n, cap):
    cap = int(max(1, min(n, cap)))
    for d in range(cap, 0, -1):
        if n % d == 0:
            return d
    return 1


def _pick_batch_tile(batch, slab_bytes, budget, target_steps=4):
    # 2 arrays (x in, out) x 2 pipeline buffers each must fit the budget.
    max_bb = max(1, budget // (4 * max(1, slab_bytes)))
    # Keep a few grid steps so prefetch/writeback overlap compute and the
    # "parallel" batch axis can shard across both TCs on v7x.
    max_bb = min(max_bb, max(1, batch // min(batch, target_steps)))
    return _largest_divisor_leq(batch, max_bb)


def _pick_row_hw_tiles(rows, hw, itemsize, budget, hw_tile=None):
    """(row_tile, hw_tile) for the 2-D (B*C, HW) view, or None if impossible."""
    per_elem = 4 * itemsize                     # x-in + out, double-buffered
    max_elems = max(1, budget // per_elem)
    min_rb = rows if rows % 8 else 8

    if hw_tile is not None:
        hwb = int(hw_tile)
    elif min_rb * hw <= max_elems:
        hwb = hw                                # whole HW fits: fewest steps
    else:
        hwb = 0
        cap = max_elems // min_rb
        for m in range(min(hw, cap) // 128, 0, -1):   # lane-dense tiles only
            cand = m * 128
            if hw % cand == 0:
                hwb = cand
                break
        if hwb == 0:
            return None
    if hw % hwb != 0 or min_rb * hwb > max_elems:
        return None

    if rows % 8 == 0:
        max_rb = max(8, max_elems // hwb)
        rb = 8
        for m in range(min(rows, max_rb) // 8, 0, -1):
            cand = m * 8
            if rows % cand == 0:
                rb = cand
                break
    else:
        rb = rows
    return rb, hwb


# --------------------------------------------------------------------------
# Wrapper
# --------------------------------------------------------------------------
def se_block(x, w1, w2, *, force_tiled=False, batch_tile=None, hw_tile=None,
             donate_x=False):
    """SE_Block forward.  x: (B, C, H, W); w1: (C//r, C); w2: (C, C//r)."""
    B, C, H, W = x.shape
    HW = H * W
    Cr = w1.shape[0]
    itemsize = jnp.dtype(x.dtype).itemsize
    vmem_limit, block_budget, n_cores = _tpu_vmem_and_cores()

    x_flat = x.reshape(B, C, HW)
    # Hoist weight transpose + cast out of the kernels (done once in XLA).
    w1t = w1.T.astype(jnp.float32)        # (C, Cr)
    w2t = w2.T.astype(jnp.float32)        # (Cr, C)

    slab_bytes = C * HW * itemsize        # one batch element's feature map
    use_fused = (4 * slab_bytes <= block_budget) and not force_tiled

    bb = None
    if use_fused:
        bb = batch_tile or _pick_batch_tile(B, slab_bytes, block_budget)
        # On multi-TensorCore parts (v7x) a 1-step "parallel" grid leaves a TC
        # idle; for single-step grids on big slabs prefer the HW-tiled path.
        if n_cores > 1 and B // bb < 2 and slab_bytes > (2 << 20):
            use_fused = False

    if use_fused:
        assert B % bb == 0
        fused_cost = pl.CostEstimate(
            flops=int(2 * B * C * HW + 4 * B * C * Cr),
            transcendentals=int(B * C),
            bytes_accessed=int(2 * B * C * HW * itemsize + 8 * C * Cr))
        out_flat = pl.pallas_call(
            _se_fused_kernel,
            out_shape=jax.ShapeDtypeStruct((B, C, HW), x.dtype),
            grid_spec=pltpu.PrefetchScalarGridSpec(
                num_scalar_prefetch=0,
                grid=(B // bb,),
                in_specs=[
                    pl.BlockSpec((bb, C, HW), lambda b: (b, 0, 0)),
                    pl.BlockSpec((C, Cr), lambda b: (0, 0)),
                    pl.BlockSpec((Cr, C), lambda b: (0, 0)),
                ],
                out_specs=pl.BlockSpec((bb, C, HW), lambda b: (b, 0, 0)),
            ),
            compiler_params=pltpu.CompilerParams(
                dimension_semantics=("parallel",),
                vmem_limit_bytes=vmem_limit),
            cost_estimate=fused_cost,
        )(x_flat, w1t, w2t)
        return out_flat.reshape(B, C, H, W)

    # ---- large feature maps: two-pass, HW-tiled path on a (B*C, HW) view ----
    # Folding B into the sublane axis keeps full (8,128) tile density even for
    # small C, and the per-row gate makes row tiles independent of batch /
    # channel boundaries.
    rows = B * C
    x_rows = x_flat.reshape(rows, HW)
    tiles = _pick_row_hw_tiles(rows, HW, itemsize, block_budget, hw_tile)
    if tiles is None:
        # TODO(synk): HW has no lane-friendly tiling and even a minimal row
        # block exceeds VMEM; a channel-last (B, HW, C) transpose would fix
        # this.  Fall back to plain XLA for this pathological shape.
        pooled = jnp.mean(x_flat.astype(jnp.float32), axis=-1)
        gate = jax.nn.sigmoid(jnp.maximum(pooled @ w1t, 0.0) @ w2t).astype(x.dtype)
        return (x_flat * gate[:, :, None]).reshape(B, C, H, W)

    rb, hwb = tiles
    nr, nhw = rows // rb, HW // hwb

    # Pass 1: per-row channel sums, accumulated over the innermost
    # "arbitrary" HW axis into a resident output block.
    pool_cost = pl.CostEstimate(
        flops=int(rows * HW), transcendentals=0,
        bytes_accessed=int(rows * HW * itemsize + rows * 4))
    sums = pl.pallas_call(
        _se_pool_kernel,
        out_shape=jax.ShapeDtypeStruct((rows, 1), jnp.float32),
        grid_spec=pltpu.PrefetchScalarGridSpec(
            num_scalar_prefetch=0,
            grid=(nr, nhw),
            in_specs=[pl.BlockSpec((rb, hwb), lambda r, h: (r, h))],
            out_specs=pl.BlockSpec((rb, 1), lambda r, h: (r, 0)),
        ),
        compiler_params=pltpu.CompilerParams(
            dimension_semantics=("parallel", "arbitrary"),
            vmem_limit_bytes=vmem_limit),
        cost_estimate=pool_cost,
    )(x_rows)

    # Tiny FC gate: negligible FLOPs; keep it off the mem-bound kernels'
    # critical path and let XLA schedule it between the two pallas_calls.
    pooled = sums.reshape(B, C) * (1.0 / HW)                       # (B, C) f32
    gate = jax.nn.sigmoid(jnp.maximum(pooled @ w1t, 0.0) @ w2t)    # (B, C) f32
    gate_rows = gate.astype(x.dtype).reshape(rows, 1)

    # Pass 2: pure HBM-streaming broadcast multiply over lane-dense HW tiles.
    scale_cost = pl.CostEstimate(
        flops=int(rows * HW), transcendentals=0,
        bytes_accessed=int(2 * rows * HW * itemsize + rows * itemsize))
    out_rows = pl.pallas_call(
        _se_scale_kernel,
        out_shape=jax.ShapeDtypeStruct((rows, HW), x.dtype),
        grid_spec=pltpu.PrefetchScalarGridSpec(
            num_scalar_prefetch=0,
            grid=(nr, nhw),
            in_specs=[
                pl.BlockSpec((rb, hwb), lambda r, h: (r, h)),
                pl.BlockSpec((rb, 1), lambda r, h: (r, 0)),
            ],
            out_specs=pl.BlockSpec((rb, hwb), lambda r, h: (r, h)),
        ),
        compiler_params=pltpu.CompilerParams(
            dimension_semantics=("parallel", "parallel"),
            vmem_limit_bytes=vmem_limit),
        cost_estimate=scale_cost,
        input_output_aliases=({0: 0} if donate_x else {}),
    )(x_rows, gate_rows)

    return out_rows.reshape(B, C, H, W)


def se_block_ref(x, w1, w2):
    """Pure-JAX reference mirroring the PyTorch module."""
    y = jnp.mean(x, axis=(2, 3))                  # (B, C)
    y = jnp.maximum(y @ w1.T, 0.0)                # (B, C//r)
    y = jax.nn.sigmoid(y @ w2.T)                  # (B, C)
    return x * y[:, :, None, None]


if __name__ == "__main__":
    # Small shapes consistent with the module: ch_in=8, reduction=4.
    B, C, H, W = 2, 8, 16, 16
    reduction = 4
    Cr = C // reduction

    key = jax.random.PRNGKey(0)
    kx, k1, k2 = jax.random.split(key, 3)
    x = jax.random.normal(kx, (B, C, H, W), dtype=jnp.float32)
    w1 = jax.random.normal(k1, (Cr, C), dtype=jnp.float32) * 0.1  # (C//r, C)
    w2 = jax.random.normal(k2, (C, Cr), dtype=jnp.float32) * 0.1  # (C, C//r)

    ref = se_block_ref(x, w1, w2)

    # Fused (small feature map) path.
    out = jax.block_until_ready(se_block(x, w1, w2))
    assert out.shape == (B, C, H, W)
    assert jnp.allclose(out, ref, atol=1e-5, rtol=1e-5), "fused path mismatch"

    # HW-tiled two-pass path (used for large feature maps); forced here to
    # exercise the accumulator + scale kernels with multiple HW grid steps.
    out_tiled = jax.block_until_ready(
        se_block(x, w1, w2, force_tiled=True, hw_tile=128))
    assert jnp.allclose(out_tiled, ref, atol=1e-5, rtol=1e-5), "tiled path mismatch"

    # Tiled path with auto-picked tiles.
    out_tiled_auto = jax.block_until_ready(se_block(x, w1, w2, force_tiled=True))
    assert jnp.allclose(out_tiled_auto, ref, atol=1e-5, rtol=1e-5), \
        "tiled (auto) path mismatch"

    # bf16 inputs: the gate is applied in bf16 by design, so tolerances are
    # loose relative to the f32 reference.
    xb = x.astype(jnp.bfloat16)
    out_bf16 = jax.block_until_ready(se_block(xb, w1, w2))
    ref_bf16 = se_block_ref(xb.astype(jnp.float32), w1, w2)
    assert jnp.allclose(out_bf16.astype(jnp.float32), ref_bf16,
                        atol=1e-1, rtol=5e-2), "bf16 fused path mismatch"

    print("KERNEL_OK")
</pallas_src>

<mosaic_0001>
module attributes {stable_mosaic.version = 11 : i64} {
  func.func @_se_fused_kernel(%arg0: i32, %arg1: memref<1x8x256xf32, #tpu.memory_space<vmem>>, %arg2: memref<8x2xf32, #tpu.memory_space<vmem>>, %arg3: memref<2x8xf32, #tpu.memory_space<vmem>>, %arg4: memref<1x8x256xf32, #tpu.memory_space<vmem>>) attributes {dimension_semantics = [#tpu.dimension_semantics<parallel>], iteration_bounds = array<i64: 2>, scalar_prefetch = 0 : i64, scratch_operands = 0 : i64, tpu.core_type = #tpu.core_type<tc>, window_params = [{transform_indices = @transform_0, window_bounds = array<i64: 1, 8, 256>}, {pipeline_mode = #tpu.pipeline_mode<synchronous>, transform_indices = @transform_1, window_bounds = array<i64: 8, 2>}, {pipeline_mode = #tpu.pipeline_mode<synchronous>, transform_indices = @transform_2, window_bounds = array<i64: 2, 8>}, {transform_indices = @transform_3, window_bounds = array<i64: 1, 8, 256>}]} {
    %c0 = arith.constant 0 : index
    %c0_0 = arith.constant 0 : index
    %c0_1 = arith.constant 0 : index
    %0 = vector.load %arg1[%c0, %c0_0, %c0_1] : memref<1x8x256xf32, #tpu.memory_space<vmem>>, vector<1x8x256xf32>
    %cst = arith.constant dense<0.000000e+00> : vector<1x8xf32>
    %1 = vector.multi_reduction <add>, %0, %cst [2] : vector<1x8x256xf32> to vector<1x8xf32>
    %cst_2 = arith.constant 3.906250e-03 : f32
    %2 = vector.broadcast %cst_2 : f32 to vector<1x8xf32>
    %3 = arith.mulf %1, %2 : vector<1x8xf32>
    %c0_3 = arith.constant 0 : index
    %c0_4 = arith.constant 0 : index
    %4 = vector.load %arg2[%c0_3, %c0_4] : memref<8x2xf32, #tpu.memory_space<vmem>>, vector<8x2xf32>
    %cst_5 = arith.constant dense<0.000000e+00> : vector<1x2xf32>
    %5 = tpu.matmul %3, %4, %cst_5 {dimension_numbers = #tpu.dot_dimension_numbers<[1], [0], [0], [1], [0, 0, 1, 1], [], []>} : vector<1x8xf32>, vector<8x2xf32>, vector<1x2xf32> -> vector<1x2xf32>
    %cst_6 = arith.constant 0.000000e+00 : f32
    %6 = vector.broadcast %cst_6 : f32 to vector<1x2xf32>
    %7 = arith.maximumf %5, %6 : vector<1x2xf32>
    %c0_7 = arith.constant 0 : index
    %c0_8 = arith.constant 0 : index
    %8 = vector.load %arg3[%c0_7, %c0_8] : memref<2x8xf32, #tpu.memory_space<vmem>>, vector<2x8xf32>
    %cst_9 = arith.constant dense<0.000000e+00> : vector<1x8xf32>
    %9 = tpu.matmul %7, %8, %cst_9 {dimension_numbers = #tpu.dot_dimension_numbers<[1], [0], [0], [1], [0, 0, 1, 1], [], []>} : vector<1x2xf32>, vector<2x8xf32>, vector<1x8xf32> -> vector<1x8xf32>
    %10 = arith.negf %9 : vector<1x8xf32>
    %11 = math.exp %10 : vector<1x8xf32>
    %cst_10 = arith.constant 1.000000e+00 : f32
    %12 = vector.broadcast %cst_10 : f32 to vector<1x8xf32>
    %13 = arith.addf %12, %11 : vector<1x8xf32>
    %14 = arith.divf %12, %13 : vector<1x8xf32>
    %c0_11 = arith.constant 0 : index
    %c0_12 = arith.constant 0 : index
    %c0_13 = arith.constant 0 : index
    %15 = vector.load %arg1[%c0_11, %c0_12, %c0_13] : memref<1x8x256xf32, #tpu.memory_space<vmem>>, vector<1x8x256xf32>
    %16 = vector.shape_cast %14 : vector<1x8xf32> to vector<1x8x1xf32>
    %17 = vector.broadcast %16 : vector<1x8x1xf32> to vector<1x8x256xf32>
    %18 = arith.mulf %15, %17 : vector<1x8x256xf32>
    %c0_14 = arith.constant 0 : index
    %c0_15 = arith.constant 0 : index
    %c0_16 = arith.constant 0 : index
    %19 = vector.load %arg4[%c0_14, %c0_15, %c0_16] : memref<1x8x256xf32, #tpu.memory_space<vmem>>, vector<1x8x256xf32>
    tpu.vector_store %arg4[%c0_14, %c0_15, %c0_16], %18 {strides = array<i32>} : memref<1x8x256xf32, #tpu.memory_space<vmem>>, vector<1x8x256xf32>,
    return
  }
  func.func @transform_0(%arg0: i32) -> (i32, i32, i32) {
    %c0_i32 = arith.constant 0 : i32
    %c0_i32_0 = arith.constant 0 : i32
    %c0_i32_1 = arith.constant 0 : i32
    return %arg0, %c0_i32, %c0_i32_0 : i32, i32, i32
  }
  func.func @transform_1(%arg0: i32) -> (i32, i32) {
    %c0_i32 = arith.constant 0 : i32
    %c0_i32_0 = arith.constant 0 : i32
    %c0_i32_1 = arith.constant 0 : i32
    return %c0_i32, %c0_i32_0 : i32, i32
  }
  func.func @transform_2(%arg0: i32) -> (i32, i32) {
    %c0_i32 = arith.constant 0 : i32
    %c0_i32_0 = arith.constant 0 : i32
    %c0_i32_1 = arith.constant 0 : i32
    return %c0_i32, %c0_i32_0 : i32, i32
  }
  func.func @transform_3(%arg0: i32) -> (i32, i32, i32) {
    %c0_i32 = arith.constant 0 : i32
    %c0_i32_0 = arith.constant 0 : i32
    %c0_i32_1 = arith.constant 0 : i32
    return %arg0, %c0_i32, %c0_i32_0 : i32, i32, i32
  }
}

</mosaic_0001>

<bundles_post_ra>
// kernel: tpu_custom_call.1
= control target key start
LH: loop header
LB: loop body
LE: loop exit
PB: predicated region body
PF: predicated region fallthrough
CT: control target
= control target key end

     0   :  { %8 = vsyncpa [#allocation3], 0  ;;  %s696_s0 = inlined_call_operand.hbm [shape: f32[2,8,256], index: 0, kind: input, shape index: {}]   ;;  %s697_s1 = inlined_call_operand.vmem [shape: f32[8,2], index: 1, kind: input, shape index: {}]   ;;  %s698_s2 = inlined_call_operand.vmem [shape: f32[2,8], index: 2, kind: input, shape index: {}]   ;;  %s699_s3 = inlined_call_operand.hbm [shape: f32[2,8,256], index: 3, kind: output, shape index: {}]  }
   0x1   :  { %10 = vsyncpa [#allocation3 + $0x1], 0 }
   0x2   :  { %11 = vsyncpa [#allocation4], 0 }
   0x3   :  { %13 = vsyncpa [#allocation4 + $0x1], 0  ;;  %s559_s12 = smov 0   ;;  %s561_s13 = smov 0  }
   0x4   :  { %s563_s14 = smov 0   ;;  %s565_s15 = smov 0  }
   0x5 LB: > { %s580_s16 = sadd.s32 4294967295, %s537_s15   ;;  %s370_s17 = sadd.s32 4294967294, %s537_s15   ;;  %s537_s15 = sphi %s565_s15, %s709_s15   ;;  %s533_s14 = sphi %s563_s14, %s708_s14   ;;  %s529_s13 = sphi %s561_s13, %s707_s13   ;;  %s525_s12 = sphi %s559_s12, %s706_s12  }
   0x6   : > { %s584_s18 = sadd.s32 1, %s537_s15   ;;  %s26_s19 = sadd.s32 1, %s533_s14 }
   0x7   : > { %s23_s20 = ssub.s32 %s537_s15, %s584_s18  ;;  %p33_p0 = scmp.ne.s32.totalorder %s533_s14, %s529_s13 }
   0x8   : > { %p24_p1 = scmp.eq.s32.totalorder %s23_s20, 0  ;;  %p34_p2 = scmp.eq.s32.totalorder %s537_s15, 0 }
   0x9   : > { %p39_p3 = scmp.ne.s32.totalorder %s529_s13, %s525_s12  ;;  %p40_p4 = scmp.eq.s32.totalorder %s580_s16, 0 }
   0xa   : > { %s596_s21 = scalar_select %p24_p1, %s533_s14, %s26_s19  }
   0xb   : > { %p598_p5 = por %p34_p2, %p33_p0  ;;  %p602_p6 = por %p40_p4, %p39_p3 }
   0xc   : > { %p105_p7 = scmp.eq.s32.totalorder %s580_s16, 1  ;;  %p111_p8 = scmp.eq.s32.totalorder %s370_s17, 1 }
   0xd   : > { %p402_p10 = scmp.lt.s32.totalorder %s537_s15, 2  ;;  %s137_s26 = sand.u32 1, %s533_s14  }
   0xe   : > { %p609_p11 = por %p105_p7, %p33_p0  ;;  %p613_p12 = por %p111_p8, %p39_p3 }
   0xf   : > { %s388_s27 = sshll.u32 %s537_s15, 4  ;;  %s373_s28 = sshll.u32 %s137_s26, 4 }
  0x10   : > { %s146_s4 = scalar_lea.hbm %s696_s0, %s388_s27  ;;  %s141_s6 = scalar_lea.vmem [#allocation2], %s373_s28 }
  0x11   : > { %s148_s5 = sshll.u32 %s146_s4, 4  ;;  %s150_s7 = sshll.u32 %s141_s6, 4  ;;  %s149_s5 = int_to_ptr.hbm [resolvable:$true] %s148_s5  ;;  %s151_s7 = int_to_ptr.vmem [resolvable:$true] %s150_s7 }
  0x12   : > { %p624_p13 = pnand %p402_p10, %p598_p5  ;;  %p376_p0 = scmp.ge.s32.totalorder %s537_s15, 1 }
  0x13   : > { %p155_p1 = scmp.lt.s32.totalorder %s537_s15, 3  ;;  %s138_s9 = scalar_lea.sflag [#allocation3], %s137_s26 }
  0x14   : > { %s441_s10 = sshra.s32 %s149_s5, 4  ;;  %p445_p3 = pneg %p624_p13  ;;  %s442_s10 = int_to_ptr.hbm [resolvable:$true] %s441_s10 }
  0x15   : > { %s443_s11 = scalar_lea.hbm %s442_s10, 16  ;;  %s448_s20 = scalar_lea.hbm %s696_s0, 32 }
  0x16   : > { %p444_p2 = scmp.ne.s32.totalorder %s442_s10, %s443_s11  ;;  %p449_p5 = scmp.lt.s32.totalorder %s442_s10, %s696_s0 }
  0x17   : > { %p450_p8 = scmp.lt.s32.totalorder %s448_s20, %s443_s11 }
  0x18   : > { %p446_p4 = pnand %p445_p3, %p444_p2 }
  0x19   : > { %p451_p10 = por %p450_p8, %p449_p5 }
  0x1a   : > { %p447_p7 = pneg %p446_p4 }
  0x1c   : > { %p452_p9 = pnand %p451_p10, %p447_p7 }
  0x1e   : > { %455 = shalt.err (!%p452_p9)
}
  0x1f   : > { %397 = dma.hbm_to_vmem [thread:$0]  (!%p624_p13), %s149_s5, 256, %s151_s7, %s138_s9  }
  0x20   : > { %p156_p2 = pnand %p376_p0, %p155_p1 }
  0x21   : > { %s645_s26 = sand.u32 (!%p156_p2), 1, %s529_s13  }
  0x22   : > { %159 = sbr.rel (%p156_p2) target bundleno = 568 (0x238), region = 32  ;;  %s377_s28 = sshll.u32 (!%p156_p2), %s645_s26, 4 }
  0x23   : > { %s162_s29 = scalar_lea.sflag (!%p156_p2), [#allocation3], %s645_s26  ;;  %s165_s30 = scalar_lea.vmem (!%p156_p2), [#allocation2], %s377_s28 }
  0x27   : > { %516 = dma.done.wait (%p602_p6), %s162_s29, 256  }
  0x28   : > { %518 = vsyncadd (%p602_p6), %s162_s29, 4294967040  ;;  %v189_v0 = vld [vmem:[%s165_s30] sm:$0xff]  ;;  %v190_v1 = vld [vmem:[%s165_s30 + $0x8] sm:$0xff]  ;;  %v197_v4 = vlaneseq  ;;  %vm200_vm0 = vcmask 64512   ;;  %vm229_vm1 = vcmask 1041408   ;;  %vm225_vm2 = vcmask 15360  }
  0x29   : > { %v191_v2 = vadd.f32 %v190_v1, %v189_v0  ;;  %v195_v3 = vld [vmem:[%s697_s1] sm:$0xff]  ;;  %s389_s23 = sshll.u32 %s580_s16, 4  ;;  %s188_s11 = scalar_lea.vmem [#allocation5], %s377_s28 }
  0x2a   : > { %218 = vmatpush.msra.mxu0 %v195_v3  ;;  %v198_v5 = vand.u32 127, %v197_v4  ;;  %v224_v9 = vld [vmem:[%s698_s2] sm:$0x3]  ;;  %v274_v12 = vshrl.u32 %v197_v4, 7  ;;  %s295_s10 = scalar_lea.hbm %s699_s3, %s389_s23  ;;  %s297_s17 = sshll.u32 %s188_s11, 4  ;;  %s298_s17 = int_to_ptr.vmem [resolvable:$true] %s297_s17 }
  0x2b   : > { %192 = vadd.xlane.f32.xlu0 %v191_v2  ;;  %380 = vmatpush.msk.msra.mxu1 %vm229_vm1, %v224_v9  ;;  %s299_s19 = sshll.u32 %s295_s10, 4  ;;  %s284_s20 = scalar_lea.sflag [#allocation4], %s645_s26  ;;  %s300_s19 = int_to_ptr.hbm [resolvable:$true] %s299_s19 }
  0x2c   : > { %436 = vset.pattern.permute.xlu0 %v274_v12  ;;  %s485_s22 = sshra.s32 %s300_s19, 4  ;;  %s491_s28 = scalar_lea.hbm %s699_s3, 32  ;;  %s486_s22 = int_to_ptr.hbm [resolvable:$true] %s485_s22 }
  0x2d   : > { %s487_s16 = scalar_lea.hbm %s486_s22, 16  ;;  %p492_p0 = scmp.lt.s32.totalorder %s486_s22, %s699_s3 }
  0x2e   : > { %p488_p6 = scmp.ne.s32.totalorder %s486_s22, %s487_s16  ;;  %p493_p1 = scmp.lt.s32.totalorder %s491_s28, %s487_s16 }
  0x30   : > { %p489_p9 = pnand %p488_p6, %p609_p11  ;;  %p494_p3 = por %p493_p1, %p492_p0 }
  0x32   : > { %p490_p13 = pneg %p489_p9 }
  0x34   : > { %p495_p4 = pnand %p494_p3, %p490_p13 }
  0x9e   : > { %v193_v6 = vpop.xlane.xlu0 %192 }
  0x9f   : > { %v194_v7 = vmul.f32 0.00390625, %v193_v6 }
  0xa1   : > { %v199_v8 = vperm.slane %v194_v7, %v198_v5 }
  0xa3   : > { %379 = vmatmul.msk.f32.vlgmr.msra.gmra.mxu0 %vm200_vm0, %v199_v8 }
 0x120   : > { %v220_v10 = vpop.f32.mrf.mxu0 }
 0x121   : > { %v223_v11 = vmax.f32 %v220_v10, 0.0 }
 0x123   : > { %381 = vmatmul.msk.f32.vlgmr.msra.gmra.mxu1 %vm225_vm2, %v223_v11 }
 0x1a0   : > { %v250_v13 = vpop.f32.mrf.mxu1 }
 0x1a1   : > { %v382_v14 = vmul.f32 -1.442695, %v250_v13 }
 0x1a3   : > { %437 = vpow2.f32 %v382_v14 }
 0x1a9   : > { %v438_v15 = vpop.eup %437 }
 0x1aa   : > { %v256_v16 = vadd.f32 1.0, %v438_v15 }
 0x1ac   : > { %439 = vrcp.f32 %v256_v16  ;;  %v268_v20 = vand.u32 2147483648, %v256_v16  ;;  %v266_v22 = vand.u32 2147483647, %v256_v16  ;;  %vm262_vm4 = vweird.f32 %v256_v16 }
 0x1ae   : > { %v269_v24 = vor.u32 1.1754944e-38, %v268_v20  ;;  %vm267_vm6 = vcmp.eq.f32.partialorder %v266_v22, 8.507059e+37 }
 0x1b2   : > { %v440_v17 = vpop.eup %439 }
 0x1b3   : > { %v258_v18 = vmul.f32 %v440_v17, %v256_v16  ;;  %vm263_vm3 = vweird.f32 %v440_v17 }
 0x1b4   : > { %vm264_vm5 = vmor %vm262_vm4, %vm263_vm3 }
 0x1b5   : > { %v259_v19 = vsub.f32 1.0, %v258_v18 }
 0x1b7   : > { %v260_v21 = vmul.f32 %v440_v17, %v259_v19 }
 0x1b9   : > { %v261_v23 = vadd.f32 %v440_v17, %v260_v21 }
 0x1bb   : > { %v265_v25 = vsel %vm264_vm5, %v440_v17, %v261_v23 }
 0x1bc   : > { %v270_v26 = vsel %vm267_vm6, %v269_v24, %v265_v25 }
 0x1bd   : > { %v272_v27 = vperm.slane %v270_v26, 0 }
 0x1bf   : > { %277 = vperm.xlu0 %436, %v272_v27  }
 0x231   : > { %v278_v28 = vpop.permute.xlu0 %277 }
 0x232   : > { %v279_v29 = vmul.f32 %v278_v28, %v189_v0  ;;  %v280_v30 = vmul.f32 %v278_v28, %v190_v1 }
 0x234   : > { %281 = vst [vmem:[%s188_s11] sm:$0xff] %v279_v29 }
 0x235   : > { %282 = vst [vmem:[%s188_s11 + $0x8] sm:$0xff] %v280_v30 }
 0x236   : > { %498 = shalt.err (!%p495_p4)
}
 0x237   : > { %392 = dma.vmem_to_hbm [thread:$0]  (%p609_p11), %s298_s17, 256, %s300_s19, %s284_s20  }
 0x238 PF: > { %s311_s26 = sand.u32 1, %s525_s12   ;;  %p705_p7 = scmp.ge.s32.totalorder %s537_s15, 2 }
 0x239   : > { %s312_s5 = scalar_lea.sflag [#allocation4], %s311_s26 }
 0x23a   : > { %p399_p5 = pnand %p705_p7, %p613_p12 }
 0x23c   : > { %p400_p8 = pneg %p399_p5 }
 0x23e   : > { %520 = dma.done.wait (%p400_p8), %s312_s5, 256  }
 0x23f   : > { %522 = vsyncadd (%p400_p8), %s312_s5, 4294967040  ;;  %p16_p10 = scmp.ge.s32.totalorder %s584_s18, 4   ;;  %s706_s12 = smov %s529_s13 }
 0x240   : > { %s707_s13 = smov %s533_s14  ;;  %s708_s14 = smov %s596_s21 }
 0x241   : > { %s709_s15 = smov %s584_s18  ;;  %18 = sbr.rel (!%p16_p10) target bundleno = 5 (0x5), region = 77 }
 0x246   :  { %318 = vsyncpa [#allocation3], 1 }
 0x247   :  { %320 = vsyncpa [#allocation3 + $0x1], 1 }
 0x248   :  { %321 = vsyncpa [#allocation4], 1 }
 0x249   :  { %323 = vsyncpa [#allocation4 + $0x1], 1 }

</bundles_post_ra>
